<compile_context>
chip_gen: v6e
topology: v6e:2x2x1
jax: 0.10.0
libtpu: 0.0.40
codegen_flags: <defaults>
</compile_context>

<pallas_src>
import functools

import jax
import jax.numpy as jnp
from jax.experimental import pallas as pl
from jax.experimental.pallas import tpu as pltpu


_LANE = 128
_WIDTH_CANDIDATES = (2048, 1024, 512, 256, 128)
_SMALL_N_FALLBACK = 1 << 18  # below ~256K elems a standalone kernel is overhead
_ONE_SIXTH = 1.0 / 6.0


def _h_sigmoid_kernel(x_ref, o_ref):
    x = x_ref[...]
    # relu6(x + 3) / 6 == clip(x + 3, 0, 6) * (1/6)  (multiply, not divide).
    o_ref[...] = (jnp.clip(x + 3.0, 0.0, 6.0) * _ONE_SIXTH).astype(o_ref.dtype)


def _round_up(v, m):
    return -(-v // m) * m


def _sublane_for_dtype(dtype):
    itemsize = jnp.dtype(dtype).itemsize
    return {4: 8, 2: 16, 1: 32}.get(itemsize, 8)


def _h_sigmoid_jnp(x):
    return jnp.clip(x + 3.0, 0.0, 6.0) * _ONE_SIXTH


@functools.lru_cache(maxsize=None)
def _tuning():
    """Generation-aware block-size / VMEM-limit / grid tuning."""
    kind = ""
    try:
        kind = jax.devices()[0].device_kind.lower()
    except Exception:
        pass
    vmem_bytes = None
    try:
        vmem_bytes = pltpu.get_tpu_info().vmem_capacity_bytes
    except Exception:
        pass
    mib = 1024 * 1024
    if ("v7" in kind) or ("7x" in kind) or (
        vmem_bytes is not None and vmem_bytes <= 64 * mib
    ):
        # v7x: 64 MiB VMEM per TC, 3.2 TB/s HBM, 2 TensorCores per chip.
        # 6 MiB blocks keep the double-buffered in+out footprint (~24 MiB)
        # under the 32 MiB scoped default while amortizing per-step overhead.
        return dict(block_bytes=6 * mib, vmem_limit=None, min_steps=4, two_cores=True)
    if "v6" in kind:
        # v6e: 128 MiB VMEM, 1.4 TB/s HBM.  8 MiB blocks (4x8 = 32 MiB of
        # double-buffered in+out) need a raised scoped-VMEM limit.
        return dict(block_bytes=8 * mib, vmem_limit=64 * mib, min_steps=2, two_cores=False)
    if "v5" in kind:
        # v5e: 16 MiB scoped-VMEM default, ~0.8 TB/s HBM: 2 MiB is enough.
        return dict(block_bytes=2 * mib, vmem_limit=None, min_steps=2, two_cores=False)
    # Unknown chip: conservative defaults that fit every scoped-VMEM default.
    return dict(block_bytes=2 * mib, vmem_limit=None, min_steps=2, two_cores=False)


def _pick_width(n):
    for w in _WIDTH_CANDIDATES:
        if n % w == 0:
            return w
    return None


def _h_sigmoid_impl(x: jax.Array, *, min_pallas_elems: int) -> jax.Array:
    orig_shape = x.shape
    orig_dtype = x.dtype
    n = x.size
    if n == 0:
        return x

    if not jnp.issubdtype(orig_dtype, jnp.floating):
        # Integer h_sigmoid would be degenerate after casting back to int;
        # follow the PyTorch module semantics (promote to float) via plain jnp.
        return _h_sigmoid_jnp(x)

    width = _pick_width(n)
    if width is None or n < min_pallas_elems:
        # Width-ragged or tiny input: pallas_call is an opaque custom call,
        # so jnp.pad + trailing slice would each be a full extra HBM pass and
        # tiny kernels are pure dispatch overhead.  XLA handles this
        # elementwise op in one fused pass.
        return _h_sigmoid_jnp(x).astype(orig_dtype)

    cfg = _tuning()
    itemsize = jnp.dtype(orig_dtype).itemsize
    sub = _sublane_for_dtype(orig_dtype)

    rows = n // width
    x2d = x.reshape(rows, width)  # contiguous reshape: layout-only, no copy

    # Block rows from the per-generation byte target, sublane aligned.
    block_rows = max(sub, (cfg["block_bytes"] // (width * itemsize)) // sub * sub)

    # Keep at least `min_steps` grid steps when there is enough work so the
    # "parallel" axis can shard across TensorCores and reach steady-state
    # pipelining.
    if rows >= cfg["min_steps"] * sub:
        block_rows = min(block_rows, _round_up(pl.cdiv(rows, cfg["min_steps"]), sub))
    if block_rows >= rows:
        block_rows = rows  # single full-extent block

    num_steps = pl.cdiv(rows, block_rows)
    if cfg["two_cores"] and num_steps > 1 and num_steps % 2 == 1:
        # Prefer an even step count so both v7x TensorCores get balanced work.
        cand = max(sub, _round_up(pl.cdiv(rows, num_steps + 1), sub))
        if cand < rows and pl.cdiv(rows, cand) % 2 == 0:
            block_rows = cand
            num_steps = pl.cdiv(rows, block_rows)

    compiler_kwargs = dict(dimension_semantics=("parallel",))
    if cfg["vmem_limit"] is not None:
        compiler_kwargs["vmem_limit_bytes"] = cfg["vmem_limit"]

    out2d = pl.pallas_call(
        _h_sigmoid_kernel,
        out_shape=jax.ShapeDtypeStruct((rows, width), orig_dtype),
        grid_spec=pltpu.PrefetchScalarGridSpec(
            num_scalar_prefetch=0,
            grid=(num_steps,),
            in_specs=[pl.BlockSpec((block_rows, width), lambda i: (i, 0))],
            out_specs=pl.BlockSpec((block_rows, width), lambda i: (i, 0)),
        ),
        compiler_params=pltpu.CompilerParams(**compiler_kwargs),
        cost_estimate=pl.CostEstimate(
            flops=4 * n, transcendentals=0, bytes_accessed=2 * n * itemsize
        ),
    )(x2d)

    return out2d.reshape(orig_shape)


# Auto-selecting entry point (plain-jnp fallback for tiny / ragged inputs) and
# a forced-Pallas variant that always runs the kernel when the size is
# width-divisible (used by the self-test below).
h_sigmoid = jax.jit(
    functools.partial(_h_sigmoid_impl, min_pallas_elems=_SMALL_N_FALLBACK)
)
h_sigmoid_pallas = jax.jit(functools.partial(_h_sigmoid_impl, min_pallas_elems=0))


if __name__ == "__main__":
    key = jax.random.PRNGKey(0)
    # NCHW input, small shape consistent with the module's usage.
    x = jax.random.normal(key, (2, 4, 16, 16), dtype=jnp.float32) * 4.0

    # Reference in plain JAX (true division; kernel uses *1/6 -> <=1 ulp diff).
    ref = jnp.clip(x + 3.0, 0.0, 6.0) / 6.0

    # Force the Pallas path even though this test tensor is tiny.
    y = jax.block_until_ready(h_sigmoid_pallas(x))
    assert y.shape == x.shape and y.dtype == x.dtype
    assert jnp.allclose(y, ref, atol=1e-6), "pallas path mismatch vs reference"

    # Auto-selecting entry point (may take the fused-jnp fallback at this size).
    y2 = jax.block_until_ready(h_sigmoid(x))
    assert jnp.allclose(y2, ref, atol=1e-6), "auto path mismatch vs reference"

    print("KERNEL_OK")
</pallas_src>

<mosaic_0001>
module attributes {stable_mosaic.version = 11 : i64} {
  func.func @_h_sigmoid_kernel(%arg0: i32, %arg1: memref<1x2048xf32, #tpu.memory_space<vmem>>, %arg2: memref<1x2048xf32, #tpu.memory_space<vmem>>) attributes {dimension_semantics = [#tpu.dimension_semantics<parallel>], iteration_bounds = array<i64: 1>, scalar_prefetch = 0 : i64, scratch_operands = 0 : i64, tpu.core_type = #tpu.core_type<tc>, window_params = [{transform_indices = @transform_0, window_bounds = array<i64: 1, 2048>}, {transform_indices = @transform_1, window_bounds = array<i64: 1, 2048>}]} {
    %c0 = arith.constant 0 : index
    %c0_0 = arith.constant 0 : index
    %0 = vector.load %arg1[%c0, %c0_0] : memref<1x2048xf32, #tpu.memory_space<vmem>>, vector<1x2048xf32>
    %cst = arith.constant 3.000000e+00 : f32
    %1 = vector.broadcast %cst : f32 to vector<1x2048xf32>
    %2 = arith.addf %0, %1 : vector<1x2048xf32>
    %cst_1 = arith.constant 0.000000e+00 : f32
    %cst_2 = arith.constant 6.000000e+00 : f32
    %3 = vector.broadcast %cst_1 : f32 to vector<1x2048xf32>
    %4 = arith.maximumf %3, %2 : vector<1x2048xf32>
    %5 = vector.broadcast %cst_2 : f32 to vector<1x2048xf32>
    %6 = arith.minimumf %5, %4 : vector<1x2048xf32>
    %cst_3 = arith.constant 0.166666672 : f32
    %7 = vector.broadcast %cst_3 : f32 to vector<1x2048xf32>
    %8 = arith.mulf %6, %7 : vector<1x2048xf32>
    %c0_4 = arith.constant 0 : index
    %c0_5 = arith.constant 0 : index
    %9 = vector.load %arg2[%c0_4, %c0_5] : memref<1x2048xf32, #tpu.memory_space<vmem>>, vector<1x2048xf32>
    tpu.vector_store %arg2[%c0_4, %c0_5], %8 {strides = array<i32>} : memref<1x2048xf32, #tpu.memory_space<vmem>>, vector<1x2048xf32>,
    return
  }
  func.func @transform_0(%arg0: i32) -> (i32, i32) {
    %c0_i32 = arith.constant 0 : i32
    %c0_i32_0 = arith.constant 0 : i32
    return %arg0, %c0_i32 : i32, i32
  }
  func.func @transform_1(%arg0: i32) -> (i32, i32) {
    %c0_i32 = arith.constant 0 : i32
    %c0_i32_0 = arith.constant 0 : i32
    return %arg0, %c0_i32 : i32, i32
  }
}

</mosaic_0001>

<bundles_post_ra>
// kernel: _h_sigmoid_impl.1
= control target key start
LH: loop header
LB: loop body
LE: loop exit
PB: predicated region body
PF: predicated region fallthrough
CT: control target
= control target key end

     0   :  { %s46_s0 = inlined_call_operand.vmem [shape: f32[1,2048], index: 0, kind: input, shape index: {}]   ;;  %s47_s1 = inlined_call_operand.vmem [shape: f32[1,2048], index: 1, kind: output, shape index: {}]  }
   0x1   :  { %v8_v0 = vld [vmem:[%s46_s0] sm:$0xff]  ;;  %v9_v1 = vld [vmem:[%s46_s0 + $0x8] sm:$0xff] }
   0x2   :  { %v10_v2 = vadd.f32 3.0, %v8_v0  ;;  %v11_v3 = vadd.f32 3.0, %v9_v1 }
   0x4   :  { %v12_v4 = vmax.f32 %v10_v2, 0.0  ;;  %v13_v5 = vmax.f32 %v11_v3, 0.0 }
   0x6   :  { %v14_v6 = vmin.f32 %v12_v4, 6.0  ;;  %v15_v7 = vmin.f32 %v13_v5, 6.0 }
   0x8   :  { %v16_v8 = vmul.f32 0.16666667, %v14_v6  ;;  %v17_v9 = vmul.f32 0.16666667, %v15_v7 }
   0xa   :  { %18 = vst [vmem:[%s47_s1] sm:$0xff] %v16_v8  ;;  %19 = vst [vmem:[%s47_s1 + $0x8] sm:$0xff] %v17_v9 }

</bundles_post_ra>
